<compile_context>
chip_gen: v5e
topology: v5e:2x2
jax: 0.10.0
libtpu: 0.0.40
codegen_flags: <defaults>
</compile_context>

<pallas_src>
import jax
import jax.numpy as jnp
from jax import lax
from jax.experimental import pallas as pl
from jax.experimental.pallas import tpu as pltpu

# ----------------------------- model config ---------------------------------
B = 8                       # batch size
N_NEG = 3                   # negatives per positive (must be < B)
NCOL = 1 + N_NEG
TEMPERATURE = 0.5
INV_TEMP = 1.0 / TEMPERATURE
SIM_FUNC = "cosine"         # {"cosine", "dot"}
USER_EMBED_DIMS = (16, 16)  # user_dims = 32
ITEM_EMBED_DIMS = (16, 16)  # item_dims = 32
MLP_DIMS = (64, 32)         # user_params["dims"] == item_params["dims"]
USER_VOCABS = (100, 50)
ITEM_VOCABS = (80, 40)
SW_VOCAB = 20
BN_EPS = 1e-5
COS_EPS = 1e-8              # torch.cosine_similarity eps

# fused-tower geometry
H1 = 2 * MLP_DIMS[0]        # 128 : fused hidden width  (user 64 | item 64)
D_EMB = MLP_DIMS[1]         # 32  : per-tower output embedding dim
LANES = 128                 # fused layer-2 output width: [u(32)|0|v(32)|0]

# concatenated one-hot vocabulary space (4 embedding features)
VOCABS = USER_VOCABS + ITEM_VOCABS           # (100, 50, 80, 40)
V_OFFS = (0, 100, 150, 230)
V_TOT = 270
V_PAD = 272                                   # round up to multiple of 8

# parameter-slab row layout (all blocks start at multiples of 8 sublanes)
R_W1 = 0                    # (V_PAD, 128) fused  (embedding-tables @ W1_blockdiag)
R_B1 = V_PAD                # row 272: (1, 128) bias 1
R_W2 = R_B1 + 8             # row 280: (128, 128) block-diag layer 2
R_B2 = R_W2 + H1            # row 408: (1, 128) bias 2
R_LOGSW = R_B2 + 8          # row 416: (1, 128) log(sample-weight table), lanes 0..19
SLAB_ROWS = R_LOGSW + 8     # 424


# ------------------------------- kernel -------------------------------------
def _youtube_sbc_kernel(idx_ref, slab_ref, out_ref):
    f32 = jnp.float32

    # ---- fused embedding lookup + both towers: 2 MXU matmuls total ---------
    # multi-hot over the concatenated vocab space (4 ones per row).
    iota_v = lax.broadcasted_iota(jnp.int32, (B, V_PAD), 1)
    mh = jnp.zeros((B, V_PAD), f32)
    for f in range(4):
        idx_f = idx_ref[pl.ds(f * B, B), :]                  # (B, 1) int32, aligned
        mh = mh + (iota_v == idx_f).astype(f32)

    w1 = slab_ref[pl.ds(R_W1, V_PAD), :]                     # (272, 128)
    b1 = slab_ref[pl.ds(R_B1, 1), :]                         # (1, 128)
    h1 = jnp.maximum(jnp.dot(mh, w1, preferred_element_type=f32) + b1, 0.0)

    w2 = slab_ref[pl.ds(R_W2, H1), :]                        # (128, 128)
    b2 = slab_ref[pl.ds(R_B2, 1), :]                         # (1, 128)
    h2 = jnp.maximum(jnp.dot(h1, w2, preferred_element_type=f32) + b2, 0.0)
    # h2 lanes: [ u(32) | zeros(32) | v(32) | zeros(32) ]

    # ---- cosine similarity: lane-masked reductions + one XLU half-roll -----
    lane = lax.broadcasted_iota(jnp.int32, (B, LANES), 1)
    u_mask = (lane < 64).astype(f32)
    h2sq = h2 * h2
    nu2 = jnp.sum(h2sq * u_mask, axis=1, keepdims=True)          # ||u||^2
    nv2 = jnp.sum(h2sq * (1.0 - u_mask), axis=1, keepdims=True)  # ||v||^2
    # roll by 64 of 128 lanes swaps the u/v halves (direction-independent).
    uv = h2 * pltpu.roll(h2, 64, axis=1)                         # [u*v|0|v*u|0]
    duv = jnp.sum(uv * u_mask, axis=1, keepdims=True)            # <u, v>
    if SIM_FUNC == "cosine":
        denom2 = (jnp.maximum(nu2, COS_EPS ** 2) *
                  jnp.maximum(nv2, COS_EPS ** 2))
        y = duv * lax.rsqrt(denom2)                              # EUP rsqrt
    else:  # "dot"
        y = duv

    # ---- sampling-bias correction + temperature (folded) -------------------
    idx_sw = idx_ref[pl.ds(4 * B, B), :]                     # (B, 1) int32
    oh_sw = (lane == idx_sw).astype(f32)                     # (B, 128) one-hot
    logsw_row = slab_ref[pl.ds(R_LOGSW, 1), :]               # (1, 128)
    log_sw = jnp.sum(oh_sw * logsw_row, axis=1, keepdims=True)
    ys = (y - log_sw) * INV_TEMP                             # (B, 1)

    # ---- in-batch negatives: scores[i, j] = ys[(i + j) % B] -----------------
    # One tiny matmul moves ys onto the lane axis (ybc[i, k] = ys[k]); the
    # NCOL shifted selections are then lane-masked XLU reductions instead of
    # NCOL separate circulant MXU matmuls.
    ri = lax.broadcasted_iota(jnp.int32, (B, B), 0)
    ci = lax.broadcasted_iota(jnp.int32, (B, B), 1)
    eye = (ri == ci).astype(f32)
    ys_lanes = jnp.broadcast_to(ys, (B, B))                  # [m, k] = ys[m]
    ybc = lax.dot_general(eye, ys_lanes, (((1,), (1,)), ((), ())),
                          preferred_element_type=f32)        # [i, k] = ys[k]

    col_sel = lax.broadcasted_iota(jnp.int32, (1, NCOL), 1)
    scores = jnp.zeros((B, NCOL), f32)
    for j in range(NCOL):
        sel = ci == (ri + j) % B                             # k == (i+j) % B
        colj = jnp.sum(jnp.where(sel, ybc, 0.0), axis=1, keepdims=True)
        scores = scores + colj * (col_sel == j).astype(f32)
    out_ref[...] = scores


# ------------------------------ wrapper --------------------------------------
def pack_model(user_tabs, item_tabs, sw_tab, p):
    """One-time parameter preparation: fold the embedding tables into the
    fused block-diagonal tower weights and pack everything into a single
    lane-aligned (424, 128) f32 slab."""
    f32 = jnp.float32
    ud, idm = sum(USER_EMBED_DIMS), sum(ITEM_EMBED_DIMS)     # 32, 32

    # block-diagonal layer 1: (64, 128)
    w1 = jnp.zeros((ud + idm, H1), f32)
    w1 = w1.at[:ud, :MLP_DIMS[0]].set(p["uw1"])
    w1 = w1.at[ud:, MLP_DIMS[0]:].set(p["iw1"])
    b1 = jnp.zeros((1, H1), f32)
    b1 = b1.at[:, :MLP_DIMS[0]].set(p["ub1"])
    b1 = b1.at[:, MLP_DIMS[0]:].set(p["ib1"])

    # block-diagonal layer 2: (128, 128), outputs [u(32)|0|v(32)|0]
    w2 = jnp.zeros((H1, LANES), f32)
    w2 = w2.at[:MLP_DIMS[0], :D_EMB].set(p["uw2"])
    w2 = w2.at[MLP_DIMS[0]:, 64:64 + D_EMB].set(p["iw2"])
    b2 = jnp.zeros((1, LANES), f32)
    b2 = b2.at[:, :D_EMB].set(p["ub2"])
    b2 = b2.at[:, 64:64 + D_EMB].set(p["ib2"])

    # fold the embedding tables into layer 1:  x @ w1 == multihot @ (T @ w1)
    T = jnp.zeros((V_TOT, ud + idm), f32)
    T = T.at[V_OFFS[0]:V_OFFS[0] + USER_VOCABS[0], 0:16].set(user_tabs[0])
    T = T.at[V_OFFS[1]:V_OFFS[1] + USER_VOCABS[1], 16:32].set(user_tabs[1])
    T = T.at[V_OFFS[2]:V_OFFS[2] + ITEM_VOCABS[0], 32:48].set(item_tabs[0])
    T = T.at[V_OFFS[3]:V_OFFS[3] + ITEM_VOCABS[1], 48:64].set(item_tabs[1])
    w1f = jnp.zeros((V_PAD, H1), f32).at[:V_TOT, :].set(T @ w1)

    # log the (strictly positive) sample-weight table once.
    logsw = jnp.zeros((1, LANES), f32).at[0, :SW_VOCAB].set(jnp.log(sw_tab[:, 0]))

    def row_pad8(v):
        return jnp.zeros((8, LANES), f32).at[0:1, :].set(v)

    slab = jnp.concatenate(
        [w1f, row_pad8(b1), w2, row_pad8(b2), row_pad8(logsw)], axis=0)
    assert slab.shape == (SLAB_ROWS, LANES)
    return slab


def pack_indices(x):
    """All 5 categorical features into one (5*B, 1) int32 array; the 4
    embedding features carry their global offset into the fused vocab space."""
    cols = [x["user_f0"] + V_OFFS[0],
            x["user_f1"] + V_OFFS[1],
            x["item_f0"] + V_OFFS[2],
            x["item_f1"] + V_OFFS[3],
            x["sample_weight_f"]]
    return jnp.concatenate([c.astype(jnp.int32) for c in cols]).reshape(5 * B, 1)


@jax.jit
def youtube_sbc_forward(x, slab):
    idx = pack_indices(x)
    vmem = pl.BlockSpec(memory_space=pltpu.MemorySpace.VMEM)
    return pl.pallas_call(
        _youtube_sbc_kernel,
        out_shape=jax.ShapeDtypeStruct((B, NCOL), jnp.float32),
        in_specs=[vmem, vmem],
        out_specs=vmem,
    )(idx, slab)


# ------------------------- params / embedding init ---------------------------
def _fused_linear_bn(key, din, dout):
    """Linear(din, dout) followed by eval-mode BatchNorm1d folded into (W, b)."""
    kw, kb = jax.random.split(key)
    w = jax.random.normal(kw, (din, dout), jnp.float32) * 0.1
    b = jax.random.normal(kb, (1, dout), jnp.float32) * 0.1
    gamma = jnp.ones((1, dout), jnp.float32)
    beta = jnp.zeros((1, dout), jnp.float32)
    rmean = jnp.zeros((1, dout), jnp.float32)
    rvar = jnp.ones((1, dout), jnp.float32)
    scale = gamma / jnp.sqrt(rvar + BN_EPS)
    shift = beta - rmean * scale
    return w * scale, b * scale + shift


def init_params(key):
    user_dims = sum(USER_EMBED_DIMS)
    item_dims = sum(ITEM_EMBED_DIMS)
    ks = jax.random.split(key, 4)
    p = {}
    p["uw1"], p["ub1"] = _fused_linear_bn(ks[0], user_dims, MLP_DIMS[0])
    p["uw2"], p["ub2"] = _fused_linear_bn(ks[1], MLP_DIMS[0], MLP_DIMS[1])
    p["iw1"], p["ib1"] = _fused_linear_bn(ks[2], item_dims, MLP_DIMS[0])
    p["iw2"], p["ib2"] = _fused_linear_bn(ks[3], MLP_DIMS[0], MLP_DIMS[1])
    return p


def init_embeddings(key):
    ks = jax.random.split(key, 5)
    user_tabs = [jax.random.normal(ks[i], (USER_VOCABS[i], USER_EMBED_DIMS[i]),
                                   jnp.float32) * 0.1 for i in range(2)]
    item_tabs = [jax.random.normal(ks[2 + i], (ITEM_VOCABS[i], ITEM_EMBED_DIMS[i]),
                                   jnp.float32) * 0.1 for i in range(2)]
    # sample-weight embedding is log()'d -> keep it strictly positive
    sw_tab = jax.random.uniform(ks[4], (SW_VOCAB, 1), jnp.float32,
                                minval=0.1, maxval=1.0)
    return user_tabs, item_tabs, sw_tab


# ------------------------------ pure-JAX ref ---------------------------------
def reference(x, user_tabs, item_tabs, sw_tab, p):
    xu = jnp.concatenate(
        [jnp.take(user_tabs[i], x[f"user_f{i}"], axis=0) for i in range(2)], axis=1)
    xi = jnp.concatenate(
        [jnp.take(item_tabs[i], x[f"item_f{i}"], axis=0) for i in range(2)], axis=1)
    sw = jnp.take(sw_tab, x["sample_weight_f"], axis=0)

    def tower(z, w1, b1, w2, b2):
        h = jnp.maximum(z @ w1 + b1, 0.0)
        return jnp.maximum(h @ w2 + b2, 0.0)

    u = tower(xu, p["uw1"], p["ub1"], p["uw2"], p["ub2"])
    v = tower(xi, p["iw1"], p["ib1"], p["iw2"], p["ib2"])
    num = jnp.sum(u * v, axis=1)
    nu = jnp.maximum(jnp.sqrt(jnp.sum(u * u, axis=1)), COS_EPS)
    nv = jnp.maximum(jnp.sqrt(jnp.sum(v * v, axis=1)), COS_EPS)
    y = (num / (nu * nv)) if SIM_FUNC == "cosine" else num
    y = y - jnp.log(sw[:, 0])
    y_expand = jnp.concatenate([y, y])
    rows = [jnp.concatenate([y[i:i + 1], y_expand[i + 1:i + 1 + N_NEG]])
            for i in range(B)]
    return jnp.stack(rows) / TEMPERATURE


# ---------------------------------- main -------------------------------------
if __name__ == "__main__":
    key = jax.random.PRNGKey(0)
    k_emb, k_mlp, k_x = jax.random.split(key, 3)

    user_tabs, item_tabs, sw_tab = init_embeddings(k_emb)
    params = init_params(k_mlp)
    slab = pack_model(user_tabs, item_tabs, sw_tab, params)   # one-time packing

    kx = jax.random.split(k_x, 5)
    x = {
        "user_f0": jax.random.randint(kx[0], (B,), 0, USER_VOCABS[0]),
        "user_f1": jax.random.randint(kx[1], (B,), 0, USER_VOCABS[1]),
        "item_f0": jax.random.randint(kx[2], (B,), 0, ITEM_VOCABS[0]),
        "item_f1": jax.random.randint(kx[3], (B,), 0, ITEM_VOCABS[1]),
        "sample_weight_f": jax.random.randint(kx[4], (B,), 0, SW_VOCAB),
    }

    scores = youtube_sbc_forward(x, slab)
    scores = jax.block_until_ready(scores)

    ref = reference(x, user_tabs, item_tabs, sw_tab, params)
    assert scores.shape == (B, NCOL)
    assert bool(jnp.all(jnp.isfinite(scores)))
    # slightly looser tol: matmul reassociation (embedding folded into W1) + rsqrt
    assert bool(jnp.allclose(scores, ref, atol=2e-3, rtol=2e-3)), (scores, ref)

    print("KERNEL_OK")
</pallas_src>

<mosaic_0001>
module attributes {stable_mosaic.version = 11 : i64} {
  func.func @_youtube_sbc_kernel(%arg0: memref<40x1xi32, #tpu.memory_space<vmem>>, %arg1: memref<424x128xf32, #tpu.memory_space<vmem>>, %arg2: memref<8x4xf32, #tpu.memory_space<vmem>>) attributes {dimension_semantics = [], scalar_prefetch = 0 : i64, scratch_operands = 0 : i64, tpu.core_type = #tpu.core_type<tc>} {
    %0 = tpu.iota {dimensions = array<i32: 1>} : vector<8x272xi32>
    %cst = arith.constant 0.000000e+00 : f32
    %1 = vector.broadcast %cst : f32 to vector<8x272xf32>
    %c0 = arith.constant 0 : index
    %c0_0 = arith.constant 0 : index
    %2 = vector.load %arg0[%c0, %c0_0] : memref<40x1xi32, #tpu.memory_space<vmem>>, vector<8x1xi32>
    %3 = vector.broadcast %2 : vector<8x1xi32> to vector<8x272xi32>
    %4 = arith.cmpi eq, %0, %3 : vector<8x272xi32>
    %5 = arith.extui %4 : vector<8x272xi1> to vector<8x272xi32>
    %6 = arith.sitofp %5 : vector<8x272xi32> to vector<8x272xf32>
    %7 = arith.addf %1, %6 : vector<8x272xf32>
    %c8 = arith.constant 8 : index
    %c0_1 = arith.constant 0 : index
    %8 = vector.load %arg0[%c8, %c0_1] : memref<40x1xi32, #tpu.memory_space<vmem>>, vector<8x1xi32>
    %9 = vector.broadcast %8 : vector<8x1xi32> to vector<8x272xi32>
    %10 = arith.cmpi eq, %0, %9 : vector<8x272xi32>
    %11 = arith.extui %10 : vector<8x272xi1> to vector<8x272xi32>
    %12 = arith.sitofp %11 : vector<8x272xi32> to vector<8x272xf32>
    %13 = arith.addf %7, %12 : vector<8x272xf32>
    %c16 = arith.constant 16 : index
    %c0_2 = arith.constant 0 : index
    %14 = vector.load %arg0[%c16, %c0_2] : memref<40x1xi32, #tpu.memory_space<vmem>>, vector<8x1xi32>
    %15 = vector.broadcast %14 : vector<8x1xi32> to vector<8x272xi32>
    %16 = arith.cmpi eq, %0, %15 : vector<8x272xi32>
    %17 = arith.extui %16 : vector<8x272xi1> to vector<8x272xi32>
    %18 = arith.sitofp %17 : vector<8x272xi32> to vector<8x272xf32>
    %19 = arith.addf %13, %18 : vector<8x272xf32>
    %c24 = arith.constant 24 : index
    %c0_3 = arith.constant 0 : index
    %20 = vector.load %arg0[%c24, %c0_3] : memref<40x1xi32, #tpu.memory_space<vmem>>, vector<8x1xi32>
    %21 = vector.broadcast %20 : vector<8x1xi32> to vector<8x272xi32>
    %22 = arith.cmpi eq, %0, %21 : vector<8x272xi32>
    %23 = arith.extui %22 : vector<8x272xi1> to vector<8x272xi32>
    %24 = arith.sitofp %23 : vector<8x272xi32> to vector<8x272xf32>
    %25 = arith.addf %19, %24 : vector<8x272xf32>
    %c0_4 = arith.constant 0 : index
    %c0_5 = arith.constant 0 : index
    %26 = vector.load %arg1[%c0_4, %c0_5] : memref<424x128xf32, #tpu.memory_space<vmem>>, vector<272x128xf32>
    %c272 = arith.constant 272 : index
    %c0_6 = arith.constant 0 : index
    %27 = vector.load %arg1[%c272, %c0_6] : memref<424x128xf32, #tpu.memory_space<vmem>>, vector<1x128xf32>
    %cst_7 = arith.constant dense<0.000000e+00> : vector<8x128xf32>
    %28 = tpu.matmul %25, %26, %cst_7 {dimension_numbers = #tpu.dot_dimension_numbers<[1], [0], [0], [1], [0, 0, 1, 1], [], []>} : vector<8x272xf32>, vector<272x128xf32>, vector<8x128xf32> -> vector<8x128xf32>
    %29 = vector.broadcast %27 : vector<1x128xf32> to vector<8x128xf32>
    %30 = arith.addf %28, %29 : vector<8x128xf32>
    %cst_8 = arith.constant 0.000000e+00 : f32
    %31 = vector.broadcast %cst_8 : f32 to vector<8x128xf32>
    %32 = arith.maximumf %30, %31 : vector<8x128xf32>
    %c280 = arith.constant 280 : index
    %c0_9 = arith.constant 0 : index
    %33 = vector.load %arg1[%c280, %c0_9] : memref<424x128xf32, #tpu.memory_space<vmem>>, vector<128x128xf32>
    %c408 = arith.constant 408 : index
    %c0_10 = arith.constant 0 : index
    %34 = vector.load %arg1[%c408, %c0_10] : memref<424x128xf32, #tpu.memory_space<vmem>>, vector<1x128xf32>
    %cst_11 = arith.constant dense<0.000000e+00> : vector<8x128xf32>
    %35 = tpu.matmul %32, %33, %cst_11 {dimension_numbers = #tpu.dot_dimension_numbers<[1], [0], [0], [1], [0, 0, 1, 1], [], []>} : vector<8x128xf32>, vector<128x128xf32>, vector<8x128xf32> -> vector<8x128xf32>
    %36 = vector.broadcast %34 : vector<1x128xf32> to vector<8x128xf32>
    %37 = arith.addf %35, %36 : vector<8x128xf32>
    %cst_12 = arith.constant 0.000000e+00 : f32
    %38 = vector.broadcast %cst_12 : f32 to vector<8x128xf32>
    %39 = arith.maximumf %37, %38 : vector<8x128xf32>
    %40 = tpu.iota {dimensions = array<i32: 1>} : vector<8x128xi32>
    %c64_i32 = arith.constant 64 : i32
    %41 = vector.broadcast %c64_i32 : i32 to vector<8x128xi32>
    %42 = arith.cmpi slt, %40, %41 : vector<8x128xi32>
    %43 = arith.extui %42 : vector<8x128xi1> to vector<8x128xi32>
    %44 = arith.sitofp %43 : vector<8x128xi32> to vector<8x128xf32>
    %45 = arith.mulf %39, %39 : vector<8x128xf32>
    %46 = arith.mulf %45, %44 : vector<8x128xf32>
    %cst_13 = arith.constant dense<0.000000e+00> : vector<8xf32>
    %47 = vector.multi_reduction <add>, %46, %cst_13 [1] : vector<8x128xf32> to vector<8xf32>
    %48 = vector.shape_cast %47 : vector<8xf32> to vector<8x1xf32>
    %cst_14 = arith.constant 1.000000e+00 : f32
    %49 = vector.broadcast %cst_14 : f32 to vector<8x128xf32>
    %50 = arith.subf %49, %44 : vector<8x128xf32>
    %51 = arith.mulf %45, %50 : vector<8x128xf32>
    %cst_15 = arith.constant dense<0.000000e+00> : vector<8xf32>
    %52 = vector.multi_reduction <add>, %51, %cst_15 [1] : vector<8x128xf32> to vector<8xf32>
    %53 = vector.shape_cast %52 : vector<8xf32> to vector<8x1xf32>
    %c64_i32_16 = arith.constant 64 : i32
    %54 = tpu.dynamic_rotate %39 by %c64_i32_16 dim 1 : vector<8x128xf32>, i32 -> vector<8x128xf32>
    %55 = arith.mulf %39, %54 : vector<8x128xf32>
    %56 = arith.mulf %55, %44 : vector<8x128xf32>
    %cst_17 = arith.constant dense<0.000000e+00> : vector<8xf32>
    %57 = vector.multi_reduction <add>, %56, %cst_17 [1] : vector<8x128xf32> to vector<8xf32>
    %58 = vector.shape_cast %57 : vector<8xf32> to vector<8x1xf32>
    %cst_18 = arith.constant 1.000000e-16 : f32
    %59 = vector.broadcast %cst_18 : f32 to vector<8x1xf32>
    %60 = arith.maximumf %48, %59 : vector<8x1xf32>
    %cst_19 = arith.constant 1.000000e-16 : f32
    %61 = vector.broadcast %cst_19 : f32 to vector<8x1xf32>
    %62 = arith.maximumf %53, %61 : vector<8x1xf32>
    %63 = arith.mulf %60, %62 : vector<8x1xf32>
    %64 = math.rsqrt %63 : vector<8x1xf32>
    %65 = arith.mulf %58, %64 : vector<8x1xf32>
    %c32 = arith.constant 32 : index
    %c0_20 = arith.constant 0 : index
    %66 = vector.load %arg0[%c32, %c0_20] : memref<40x1xi32, #tpu.memory_space<vmem>>, vector<8x1xi32>
    %67 = vector.broadcast %66 : vector<8x1xi32> to vector<8x128xi32>
    %68 = arith.cmpi eq, %40, %67 : vector<8x128xi32>
    %69 = arith.extui %68 : vector<8x128xi1> to vector<8x128xi32>
    %70 = arith.sitofp %69 : vector<8x128xi32> to vector<8x128xf32>
    %c416 = arith.constant 416 : index
    %c0_21 = arith.constant 0 : index
    %71 = vector.load %arg1[%c416, %c0_21] : memref<424x128xf32, #tpu.memory_space<vmem>>, vector<1x128xf32>
    %72 = vector.broadcast %71 : vector<1x128xf32> to vector<8x128xf32>
    %73 = arith.mulf %70, %72 : vector<8x128xf32>
    %cst_22 = arith.constant dense<0.000000e+00> : vector<8xf32>
    %74 = vector.multi_reduction <add>, %73, %cst_22 [1] : vector<8x128xf32> to vector<8xf32>
    %75 = vector.shape_cast %74 : vector<8xf32> to vector<8x1xf32>
    %76 = arith.subf %65, %75 : vector<8x1xf32>
    %cst_23 = arith.constant 2.000000e+00 : f32
    %77 = vector.broadcast %cst_23 : f32 to vector<8x1xf32>
    %78 = arith.mulf %76, %77 : vector<8x1xf32>
    %79 = tpu.iota {dimensions = array<i32: 0>} : vector<8x8xi32>
    %80 = tpu.iota {dimensions = array<i32: 1>} : vector<8x8xi32>
    %81 = arith.cmpi eq, %79, %80 : vector<8x8xi32>
    %82 = arith.extui %81 : vector<8x8xi1> to vector<8x8xi32>
    %83 = arith.sitofp %82 : vector<8x8xi32> to vector<8x8xf32>
    %84 = vector.shape_cast %78 : vector<8x1xf32> to vector<8x1xf32>
    %85 = vector.broadcast %84 : vector<8x1xf32> to vector<8x8xf32>
    %cst_24 = arith.constant dense<0.000000e+00> : vector<8x8xf32>
    %86 = tpu.matmul %83, %85, %cst_24 {dimension_numbers = #tpu.dot_dimension_numbers<[1], [1], [0], [0], [0, 0, 1, 0], [], []>} : vector<8x8xf32>, vector<8x8xf32>, vector<8x8xf32> -> vector<8x8xf32>
    %87 = tpu.iota {dimensions = array<i32: 1>} : vector<1x4xi32>
    %cst_25 = arith.constant 0.000000e+00 : f32
    %88 = vector.broadcast %cst_25 : f32 to vector<8x4xf32>
    %c0_i32 = arith.constant 0 : i32
    %89 = vector.broadcast %c0_i32 : i32 to vector<8x8xi32>
    %90 = arith.addi %79, %89 : vector<8x8xi32>
    %c8_i32 = arith.constant 8 : i32
    %c0_i32_26 = arith.constant 0 : i32
    %91 = arith.cmpi eq, %c8_i32, %c0_i32_26 : i32
    %c1_i32 = arith.constant 1 : i32
    %92 = arith.select %91, %c1_i32, %c8_i32 : i32
    %93 = vector.broadcast %92 : i32 to vector<8x8xi32>
    %94 = arith.remsi %90, %93 : vector<8x8xi32>
    %c0_i32_27 = arith.constant 0 : i32
    %95 = vector.broadcast %c0_i32_27 : i32 to vector<8x8xi32>
    %96 = arith.cmpi ne, %94, %95 : vector<8x8xi32>
    %c0_i32_28 = arith.constant 0 : i32
    %97 = vector.broadcast %c0_i32_28 : i32 to vector<8x8xi32>
    %98 = arith.cmpi slt, %94, %97 : vector<8x8xi32>
    %c0_i32_29 = arith.constant 0 : i32
    %99 = arith.cmpi slt, %92, %c0_i32_29 : i32
    %100 = vector.broadcast %99 : i1 to vector<8x8xi1>
    %101 = vector.broadcast %100 : vector<8x8xi1> to vector<8x8xi1>
    %102 = arith.xori %98, %101 : vector<8x8xi1>
    %103 = arith.andi %102, %96 : vector<8x8xi1>
    %104 = vector.broadcast %92 : i32 to vector<8x8xi32>
    %105 = arith.addi %94, %104 : vector<8x8xi32>
    %106 = arith.select %103, %105, %94 : vector<8x8xi1>, vector<8x8xi32>
    %107 = arith.cmpi eq, %80, %106 : vector<8x8xi32>
    %cst_30 = arith.constant 0.000000e+00 : f32
    %108 = vector.broadcast %cst_30 : f32 to vector<8x8xf32>
    %109 = arith.select %107, %86, %108 : vector<8x8xi1>, vector<8x8xf32>
    %cst_31 = arith.constant dense<0.000000e+00> : vector<8xf32>
    %110 = vector.multi_reduction <add>, %109, %cst_31 [1] : vector<8x8xf32> to vector<8xf32>
    %111 = vector.shape_cast %110 : vector<8xf32> to vector<8x1xf32>
    %c0_i32_32 = arith.constant 0 : i32
    %112 = vector.broadcast %c0_i32_32 : i32 to vector<1x4xi32>
    %113 = arith.cmpi eq, %87, %112 : vector<1x4xi32>
    %114 = arith.extui %113 : vector<1x4xi1> to vector<1x4xi32>
    %115 = arith.sitofp %114 : vector<1x4xi32> to vector<1x4xf32>
    %116 = vector.broadcast %111 : vector<8x1xf32> to vector<8x4xf32>
    %117 = vector.broadcast %115 : vector<1x4xf32> to vector<8x4xf32>
    %118 = arith.mulf %116, %117 : vector<8x4xf32>
    %119 = arith.addf %88, %118 : vector<8x4xf32>
    %c1_i32_33 = arith.constant 1 : i32
    %120 = vector.broadcast %c1_i32_33 : i32 to vector<8x8xi32>
    %121 = arith.addi %79, %120 : vector<8x8xi32>
    %c8_i32_34 = arith.constant 8 : i32
    %c0_i32_35 = arith.constant 0 : i32
    %122 = arith.cmpi eq, %c8_i32_34, %c0_i32_35 : i32
    %c1_i32_36 = arith.constant 1 : i32
    %123 = arith.select %122, %c1_i32_36, %c8_i32_34 : i32
    %124 = vector.broadcast %123 : i32 to vector<8x8xi32>
    %125 = arith.remsi %121, %124 : vector<8x8xi32>
    %c0_i32_37 = arith.constant 0 : i32
    %126 = vector.broadcast %c0_i32_37 : i32 to vector<8x8xi32>
    %127 = arith.cmpi ne, %125, %126 : vector<8x8xi32>
    %c0_i32_38 = arith.constant 0 : i32
    %128 = vector.broadcast %c0_i32_38 : i32 to vector<8x8xi32>
    %129 = arith.cmpi slt, %125, %128 : vector<8x8xi32>
    %c0_i32_39 = arith.constant 0 : i32
    %130 = arith.cmpi slt, %123, %c0_i32_39 : i32
    %131 = vector.broadcast %130 : i1 to vector<8x8xi1>
    %132 = vector.broadcast %131 : vector<8x8xi1> to vector<8x8xi1>
    %133 = arith.xori %129, %132 : vector<8x8xi1>
    %134 = arith.andi %133, %127 : vector<8x8xi1>
    %135 = vector.broadcast %123 : i32 to vector<8x8xi32>
    %136 = arith.addi %125, %135 : vector<8x8xi32>
    %137 = arith.select %134, %136, %125 : vector<8x8xi1>, vector<8x8xi32>
    %138 = arith.cmpi eq, %80, %137 : vector<8x8xi32>
    %cst_40 = arith.constant 0.000000e+00 : f32
    %139 = vector.broadcast %cst_40 : f32 to vector<8x8xf32>
    %140 = arith.select %138, %86, %139 : vector<8x8xi1>, vector<8x8xf32>
    %cst_41 = arith.constant dense<0.000000e+00> : vector<8xf32>
    %141 = vector.multi_reduction <add>, %140, %cst_41 [1] : vector<8x8xf32> to vector<8xf32>
    %142 = vector.shape_cast %141 : vector<8xf32> to vector<8x1xf32>
    %c1_i32_42 = arith.constant 1 : i32
    %143 = vector.broadcast %c1_i32_42 : i32 to vector<1x4xi32>
    %144 = arith.cmpi eq, %87, %143 : vector<1x4xi32>
    %145 = arith.extui %144 : vector<1x4xi1> to vector<1x4xi32>
    %146 = arith.sitofp %145 : vector<1x4xi32> to vector<1x4xf32>
    %147 = vector.broadcast %142 : vector<8x1xf32> to vector<8x4xf32>
    %148 = vector.broadcast %146 : vector<1x4xf32> to vector<8x4xf32>
    %149 = arith.mulf %147, %148 : vector<8x4xf32>
    %150 = arith.addf %119, %149 : vector<8x4xf32>
    %c2_i32 = arith.constant 2 : i32
    %151 = vector.broadcast %c2_i32 : i32 to vector<8x8xi32>
    %152 = arith.addi %79, %151 : vector<8x8xi32>
    %c8_i32_43 = arith.constant 8 : i32
    %c0_i32_44 = arith.constant 0 : i32
    %153 = arith.cmpi eq, %c8_i32_43, %c0_i32_44 : i32
    %c1_i32_45 = arith.constant 1 : i32
    %154 = arith.select %153, %c1_i32_45, %c8_i32_43 : i32
    %155 = vector.broadcast %154 : i32 to vector<8x8xi32>
    %156 = arith.remsi %152, %155 : vector<8x8xi32>
    %c0_i32_46 = arith.constant 0 : i32
    %157 = vector.broadcast %c0_i32_46 : i32 to vector<8x8xi32>
    %158 = arith.cmpi ne, %156, %157 : vector<8x8xi32>
    %c0_i32_47 = arith.constant 0 : i32
    %159 = vector.broadcast %c0_i32_47 : i32 to vector<8x8xi32>
    %160 = arith.cmpi slt, %156, %159 : vector<8x8xi32>
    %c0_i32_48 = arith.constant 0 : i32
    %161 = arith.cmpi slt, %154, %c0_i32_48 : i32
    %162 = vector.broadcast %161 : i1 to vector<8x8xi1>
    %163 = vector.broadcast %162 : vector<8x8xi1> to vector<8x8xi1>
    %164 = arith.xori %160, %163 : vector<8x8xi1>
    %165 = arith.andi %164, %158 : vector<8x8xi1>
    %166 = vector.broadcast %154 : i32 to vector<8x8xi32>
    %167 = arith.addi %156, %166 : vector<8x8xi32>
    %168 = arith.select %165, %167, %156 : vector<8x8xi1>, vector<8x8xi32>
    %169 = arith.cmpi eq, %80, %168 : vector<8x8xi32>
    %cst_49 = arith.constant 0.000000e+00 : f32
    %170 = vector.broadcast %cst_49 : f32 to vector<8x8xf32>
    %171 = arith.select %169, %86, %170 : vector<8x8xi1>, vector<8x8xf32>
    %cst_50 = arith.constant dense<0.000000e+00> : vector<8xf32>
    %172 = vector.multi_reduction <add>, %171, %cst_50 [1] : vector<8x8xf32> to vector<8xf32>
    %173 = vector.shape_cast %172 : vector<8xf32> to vector<8x1xf32>
    %c2_i32_51 = arith.constant 2 : i32
    %174 = vector.broadcast %c2_i32_51 : i32 to vector<1x4xi32>
    %175 = arith.cmpi eq, %87, %174 : vector<1x4xi32>
    %176 = arith.extui %175 : vector<1x4xi1> to vector<1x4xi32>
    %177 = arith.sitofp %176 : vector<1x4xi32> to vector<1x4xf32>
    %178 = vector.broadcast %173 : vector<8x1xf32> to vector<8x4xf32>
    %179 = vector.broadcast %177 : vector<1x4xf32> to vector<8x4xf32>
    %180 = arith.mulf %178, %179 : vector<8x4xf32>
    %181 = arith.addf %150, %180 : vector<8x4xf32>
    %c3_i32 = arith.constant 3 : i32
    %182 = vector.broadcast %c3_i32 : i32 to vector<8x8xi32>
    %183 = arith.addi %79, %182 : vector<8x8xi32>
    %c8_i32_52 = arith.constant 8 : i32
    %c0_i32_53 = arith.constant 0 : i32
    %184 = arith.cmpi eq, %c8_i32_52, %c0_i32_53 : i32
    %c1_i32_54 = arith.constant 1 : i32
    %185 = arith.select %184, %c1_i32_54, %c8_i32_52 : i32
    %186 = vector.broadcast %185 : i32 to vector<8x8xi32>
    %187 = arith.remsi %183, %186 : vector<8x8xi32>
    %c0_i32_55 = arith.constant 0 : i32
    %188 = vector.broadcast %c0_i32_55 : i32 to vector<8x8xi32>
    %189 = arith.cmpi ne, %187, %188 : vector<8x8xi32>
    %c0_i32_56 = arith.constant 0 : i32
    %190 = vector.broadcast %c0_i32_56 : i32 to vector<8x8xi32>
    %191 = arith.cmpi slt, %187, %190 : vector<8x8xi32>
    %c0_i32_57 = arith.constant 0 : i32
    %192 = arith.cmpi slt, %185, %c0_i32_57 : i32
    %193 = vector.broadcast %192 : i1 to vector<8x8xi1>
    %194 = vector.broadcast %193 : vector<8x8xi1> to vector<8x8xi1>
    %195 = arith.xori %191, %194 : vector<8x8xi1>
    %196 = arith.andi %195, %189 : vector<8x8xi1>
    %197 = vector.broadcast %185 : i32 to vector<8x8xi32>
    %198 = arith.addi %187, %197 : vector<8x8xi32>
    %199 = arith.select %196, %198, %187 : vector<8x8xi1>, vector<8x8xi32>
    %200 = arith.cmpi eq, %80, %199 : vector<8x8xi32>
    %cst_58 = arith.constant 0.000000e+00 : f32
    %201 = vector.broadcast %cst_58 : f32 to vector<8x8xf32>
    %202 = arith.select %200, %86, %201 : vector<8x8xi1>, vector<8x8xf32>
    %cst_59 = arith.constant dense<0.000000e+00> : vector<8xf32>
    %203 = vector.multi_reduction <add>, %202, %cst_59 [1] : vector<8x8xf32> to vector<8xf32>
    %204 = vector.shape_cast %203 : vector<8xf32> to vector<8x1xf32>
    %c3_i32_60 = arith.constant 3 : i32
    %205 = vector.broadcast %c3_i32_60 : i32 to vector<1x4xi32>
    %206 = arith.cmpi eq, %87, %205 : vector<1x4xi32>
    %207 = arith.extui %206 : vector<1x4xi1> to vector<1x4xi32>
    %208 = arith.sitofp %207 : vector<1x4xi32> to vector<1x4xf32>
    %209 = vector.broadcast %204 : vector<8x1xf32> to vector<8x4xf32>
    %210 = vector.broadcast %208 : vector<1x4xf32> to vector<8x4xf32>
    %211 = arith.mulf %209, %210 : vector<8x4xf32>
    %212 = arith.addf %181, %211 : vector<8x4xf32>
    %c0_61 = arith.constant 0 : index
    %c0_62 = arith.constant 0 : index
    %213 = vector.load %arg2[%c0_61, %c0_62] : memref<8x4xf32, #tpu.memory_space<vmem>>, vector<8x4xf32>
    tpu.vector_store %arg2[%c0_61, %c0_62], %212 {strides = array<i32>} : memref<8x4xf32, #tpu.memory_space<vmem>>, vector<8x4xf32>,
    return
  }
}

</mosaic_0001>

<bundles_post_ra>
// kernel: youtube_sbc_forward.1
= control target key start
LH: loop header
LB: loop body
LE: loop exit
PB: predicated region body
PF: predicated region fallthrough
CT: control target
= control target key end

     0   :  { %7 = vsyncpa [#allocation3], 0  ;;  %s472_s12 = smov [#allocation2]   ;;  %s473_s14 = smov 128   ;;  %s564_s0 = inlined_call_operand.vmem [shape: s32[40,1], index: 0, kind: input, shape index: {}]   ;;  %s565_s1 = inlined_call_operand.hbm [shape: f32[424,128], index: 1, kind: input, shape index: {}]   ;;  %s566_s2 = inlined_call_operand.vmem [shape: f32[8,4], index: 2, kind: output, shape index: {}]  }
   0x1   :  { %s14_s11 = sshll.u32 %s565_s1, 4  ;;  %s16_s13 = sshll.u32 %s472_s12, 4  ;;  %s15_s11 = int_to_ptr.hbm [resolvable:$true] %s14_s11  ;;  %s17_s13 = int_to_ptr.vmem [resolvable:$true] %s16_s13 }
   0x2   :  { %s474_s15 = smov 8  }
   0x3   :  { %22 = dma.hbm_to_vmem [thread:$0]  %s15_s11, 6784, %s17_s13, [#allocation3], %s473_s14, %s473_s14, %s474_s15  }
   0x4   :  { %470 = dma.done.wait [#allocation3], 6784  }
   0x5   :  { %471 = vsyncadd [#allocation3], 4294960512  ;;  %v475_v0 = vmov 0   ;;  %v63_v1 = vld [vmem:[%s564_s0 + $0x10] sm:$0xff]  ;;  %v31_v2 = vld [vmem:[%s564_s0] sm:$0xff]  ;;  %v27_v44 = vlaneseq  ;;  %v476_v55 = vmov 0.0  }
   0x6   :  { %439 = vset.pattern.permute.xlu1 %v475_v0  ;;  %438 = vset.pattern.permute.xlu0 %v475_v0  ;;  %v110_v3 = vld [vmem:[#allocation2 + $0x78] sm:$0xff]  ;;  %v109_v5 = vld [vmem:[#allocation2 + $0x70] sm:$0xff]  ;;  %v108_v7 = vld [vmem:[#allocation2 + $0x68] sm:$0xff]  ;;  %vm131_vm12 = vcmask 130048   ;;  %s477_s23 = smov 64  }
   0x7   :  { %440 = vset.pattern.permute.xlu2 %v475_v0  ;;  %65 = vperm.xlu1 %439, %v63_v1   ;;  %v126_v4 = vld [vmem:[#allocation2 + $0xf8] sm:$0xff]  ;;  %v125_v6 = vld [vmem:[#allocation2 + $0xf0] sm:$0xff]  ;;  %v124_v8 = vld [vmem:[#allocation2 + $0xe8] sm:$0xff]  ;;  %v509_v47 = vand.u32 127, %v27_v44 }
   0x8   :  { %33 = vperm.xlu0 %438, %v31_v2   ;;  %135 = vmatpush.msra.mxu0 %v110_v3  ;;  %v79_v9 = vld [vmem:[%s564_s0 + $0x18] sm:$0xff]  ;;  %v107_v10 = vld [vmem:[#allocation2 + $0x60] sm:$0xff]  ;;  %v47_v12 = vld [vmem:[%s564_s0 + $0x8] sm:$0xff] }
   0x9   :  { %155 = vmatpush.msra.mxu1 %v126_v4  ;;  %v123_v11 = vld [vmem:[#allocation2 + $0xe0] sm:$0xff]  ;;  %v106_v13 = vld [vmem:[#allocation2 + $0x58] sm:$0xff]  ;;  %v105_v15 = vld [vmem:[#allocation2 + $0x50] sm:$0xff]  ;;  %v29_v52 = vadd.s32 128, %v509_v47  ;;  %v30_v53 = vadd.s32 256, %v509_v47  ;;  %vm235_vm13 = vcmp.lt.s32.totalorder %v509_v47, 64 }
   0xa   :  { %136 = vmatpush.msra.mxu0 %v109_v5  ;;  %v122_v14 = vld [vmem:[#allocation2 + $0xd8] sm:$0xff]  ;;  %v121_v16 = vld [vmem:[#allocation2 + $0xd0] sm:$0xff]  ;;  %v104_v17 = vld [vmem:[#allocation2 + $0x48] sm:$0xff] }
   0xb   :  { %156 = vmatpush.msra.mxu1 %v125_v6  ;;  %v120_v18 = vld [vmem:[#allocation2 + $0xc8] sm:$0xff]  ;;  %v103_v19 = vld [vmem:[#allocation2 + $0x40] sm:$0xff]  ;;  %v102_v21 = vld [vmem:[#allocation2 + $0x38] sm:$0xff] }
   0xc   :  { %137 = vmatpush.msra.mxu0 %v108_v7  ;;  %v119_v20 = vld [vmem:[#allocation2 + $0xc0] sm:$0xff]  ;;  %v118_v22 = vld [vmem:[#allocation2 + $0xb8] sm:$0xff]  ;;  %v101_v23 = vld [vmem:[#allocation2 + $0x30] sm:$0xff] }
   0xd   :  { %157 = vmatpush.msra.mxu1 %v124_v8  ;;  %v117_v24 = vld [vmem:[#allocation2 + $0xb0] sm:$0xff]  ;;  %v100_v25 = vld [vmem:[#allocation2 + $0x28] sm:$0xff]  ;;  %v99_v27 = vld [vmem:[#allocation2 + $0x20] sm:$0xff] }
   0xe   :  { %138 = vmatpush.msra.mxu0 %v107_v10  ;;  %v116_v26 = vld [vmem:[#allocation2 + $0xa8] sm:$0xff]  ;;  %v115_v28 = vld [vmem:[#allocation2 + $0xa0] sm:$0xff]  ;;  %v98_v29 = vld [vmem:[#allocation2 + $0x18] sm:$0xff] }
   0xf   :  { %158 = vmatpush.msra.mxu1 %v123_v11  ;;  %81 = vperm.xlu1 %439, %v79_v9   ;;  %v114_v30 = vld [vmem:[#allocation2 + $0x98] sm:$0xff]  ;;  %v97_v31 = vld [vmem:[#allocation2 + $0x10] sm:$0xff]  ;;  %v96_v33 = vld [vmem:[#allocation2 + $0x8] sm:$0xff] }
  0x10   :  { %49 = vperm.xlu0 %438, %v47_v12   ;;  %139 = vmatpush.msra.mxu0 %v106_v13  ;;  %v113_v32 = vld [vmem:[#allocation2 + $0x90] sm:$0xff]  ;;  %v112_v34 = vld [vmem:[#allocation2 + $0x88] sm:$0xff]  ;;  %v127_v36 = vld [vmem:[#allocation2 + $0x100] sm:$0xff] }
  0x11   :  { %159 = vmatpush.msra.mxu1 %v122_v14  ;;  %v128_v35 = vld [vmem:[#allocation2 + $0x108] sm:$0xff]  ;;  %v95_v37 = vld [vmem:[#allocation2] sm:$0xff]  ;;  %v211_v39 = vld [vmem:[#allocation2 + $0x190] sm:$0xff] }
  0x12   :  { %140 = vmatpush.msra.mxu0 %v105_v15  ;;  %189 = vmatpush.msra.mxu2 %v128_v35  ;;  %v111_v38 = vld [vmem:[#allocation2 + $0x80] sm:$0xff]  ;;  %v210_v40 = vld [vmem:[#allocation2 + $0x188] sm:$0xff]  ;;  %v208_v42 = vld [vmem:[#allocation2 + $0x178] sm:$0xff] }
  0x13   :  { %160 = vmatpush.msra.mxu1 %v121_v16  ;;  %214 = vmatpush.msra.mxu3 %v211_v39  ;;  %v209_v41 = vld [vmem:[#allocation2 + $0x180] sm:$0xff]  ;;  %v207_v43 = vld [vmem:[#allocation2 + $0x170] sm:$0xff]  ;;  %v206_v45 = vld [vmem:[#allocation2 + $0x168] sm:$0xff] }
  0x14   :  { %141 = vmatpush.msra.mxu0 %v104_v17  ;;  %190 = vmatpush.msra.mxu2 %v127_v36  ;;  %v205_v46 = vld [vmem:[#allocation2 + $0x160] sm:$0xff]  ;;  %v204_v48 = vld [vmem:[#allocation2 + $0x158] sm:$0xff]  ;;  %v203_v51 = vld [vmem:[#allocation2 + $0x150] sm:$0xff] }
  0x15   :  { %161 = vmatpush.msra.mxu1 %v120_v18  ;;  %215 = vmatpush.msra.mxu3 %v210_v40  ;;  %v202_v54 = vld [vmem:[#allocation2 + $0x148] sm:$0xff]  ;;  %v201_v15 = vld [vmem:[#allocation2 + $0x140] sm:$0xff]  ;;  %v200_v16 = vld [vmem:[#allocation2 + $0x138] sm:$0xff] }
  0x16   :  { %142 = vmatpush.msra.mxu0 %v103_v19  ;;  %v199_v17 = vld [vmem:[#allocation2 + $0x130] sm:$0xff]  ;;  %v198_v18 = vld [vmem:[#allocation2 + $0x128] sm:$0xff]  ;;  %v197_v19 = vld [vmem:[#allocation2 + $0x120] sm:$0xff] }
  0x17   :  { %162 = vmatpush.msra.mxu1 %v119_v20  ;;  %216 = vmatpush.msra.mxu3 %v209_v41  ;;  %v196_v20 = vld [vmem:[#allocation2 + $0x118] sm:$0xff] }
  0x18   :  { %143 = vmatpush.msra.mxu0 %v102_v21  ;;  %v441_v21 = vld [vmem:[#allocation2 + $0x110] ss:$0 sm:$0xff] }
  0x19   :  { %163 = vmatpush.msra.mxu1 %v118_v22  ;;  %217 = vmatpush.msra.mxu3 %v208_v42  ;;  %v443_v42 = vld [vmem:[#allocation2 + $0x1a0] ss:$0 sm:$0xff] }
  0x1a   :  { %144 = vmatpush.msra.mxu0 %v101_v23 }
  0x1b   :  { %164 = vmatpush.msra.mxu1 %v117_v24  ;;  %218 = vmatpush.msra.mxu3 %v207_v43 }
  0x1c   :  { %145 = vmatpush.msra.mxu0 %v100_v25 }
  0x1d   :  { %165 = vmatpush.msra.mxu1 %v116_v26  ;;  %219 = vmatpush.msra.mxu3 %v206_v45 }
  0x1e   :  { %146 = vmatpush.msra.mxu0 %v99_v27 }
  0x1f   :  { %166 = vmatpush.msra.mxu1 %v115_v28  ;;  %220 = vmatpush.msra.mxu3 %v205_v46 }
  0x20   :  { %147 = vmatpush.msra.mxu0 %v98_v29  ;;  %v442_v29 = vld [vmem:[#allocation2 + $0x198] ss:$0 sm:$0xff] }
  0x21   :  { %167 = vmatpush.msra.mxu1 %v114_v30  ;;  %221 = vmatpush.msra.mxu3 %v204_v48 }
  0x22   :  { %148 = vmatpush.msra.mxu0 %v97_v31  ;;  %v423_v31 = vsel %vm235_vm13, 1.0, %v476_v55 }
  0x23   :  { %168 = vmatpush.msra.mxu1 %v113_v32  ;;  %222 = vmatpush.msra.mxu3 %v203_v51 }
  0x24   :  { %149 = vmatpush.msra.mxu0 %v96_v33 }
  0x25   :  { %169 = vmatpush.msra.mxu1 %v112_v34  ;;  %223 = vmatpush.msra.mxu3 %v202_v54  ;;  %v242_v34 = vsub.f32 1.0, %v423_v31 }
  0x26   :  { %150 = vmatpush.msra.mxu0 %v95_v37 }
  0x27   :  { %170 = vmatpush.msra.mxu1 %v111_v38  ;;  %224 = vmatpush.msra.mxu3 %v201_v15  ;;  %v266_v38 = vld [vmem:[%s564_s0 + $0x20] sm:$0xff] }
  0x29   :  { %225 = vmatpush.msra.mxu3 %v200_v16 }
  0x2b   :  { %226 = vmatpush.msra.mxu3 %v199_v17 }
  0x2d   :  { %227 = vmatpush.msra.mxu3 %v198_v18 }
  0x2f   :  { %228 = vmatpush.msra.mxu3 %v197_v19 }
  0x31   :  { %229 = vmatpush.msra.mxu3 %v196_v20 }
  0x79   :  { %v66_v49 = vpop.permute.xlu1 %65 }
  0x7a   :  { %v34_v50 = vpop.permute.xlu0 %33  ;;  %vm67_vm3 = vcmp.eq.s32.totalorder %v509_v47, %v66_v49  ;;  %vm68_vm4 = vcmp.eq.s32.totalorder %v29_v52, %v66_v49  ;;  %vm69_vm5 = vcmp.eq.s32.totalorder %v30_v53, %v66_v49 }
  0x7b   :  { %vm35_vm0 = vcmp.eq.s32.totalorder %v509_v47, %v34_v50  ;;  %vm36_vm1 = vcmp.eq.s32.totalorder %v29_v52, %v34_v50  ;;  %vm37_vm2 = vcmp.eq.s32.totalorder %v30_v53, %v34_v50  ;;  %v418_v3 = vsel %vm69_vm5, 1.0, %v476_v55 }
  0x7c   :  { %v410_v56 = vsel %vm35_vm0, 1.0, %v476_v55  ;;  %v411_v57 = vsel %vm36_vm1, 1.0, %v476_v55  ;;  %v412_v60 = vsel %vm37_vm2, 1.0, %v476_v55  ;;  %v416_v4 = vsel %vm67_vm3, 1.0, %v476_v55 }
  0x7d   :  { %v417_v5 = vsel %vm68_vm4, 1.0, %v476_v55  ;;  %vm285_vm2 = vcmask 64512  }
  0x81   :  { %v82_v58 = vpop.permute.xlu1 %81 }
  0x82   :  { %v50_v59 = vpop.permute.xlu0 %49  ;;  %vm85_vm9 = vcmp.eq.s32.totalorder %v30_v53, %v82_v58  ;;  %vm83_vm10 = vcmp.eq.s32.totalorder %v509_v47, %v82_v58  ;;  %vm84_vm11 = vcmp.eq.s32.totalorder %v29_v52, %v82_v58 }
  0x83   :  { %vm51_vm6 = vcmp.eq.s32.totalorder %v509_v47, %v50_v59  ;;  %vm52_vm7 = vcmp.eq.s32.totalorder %v29_v52, %v50_v59  ;;  %vm53_vm8 = vcmp.eq.s32.totalorder %v30_v53, %v50_v59  ;;  %v421_v9 = vsel %vm85_vm9, 1.0, %v476_v55 }
  0x84   :  { %v413_v61 = vsel %vm51_vm6, 1.0, %v476_v55  ;;  %v414_v62 = vsel %vm52_vm7, 1.0, %v476_v55  ;;  %v415_v63 = vsel %vm53_vm8, 1.0, %v476_v55  ;;  %v419_v10 = vsel %vm83_vm10, 1.0, %v476_v55 }
  0x85   :  { %v62_v0 = vadd.f32 %v415_v63, %v412_v60  ;;  %v60_v1 = vadd.f32 %v413_v61, %v410_v56  ;;  %v61_v2 = vadd.f32 %v414_v62, %v411_v57  ;;  %v420_v11 = vsel %vm84_vm11, 1.0, %v476_v55 }
  0x86   :  { %v281_v62 = vshrl.u32 %v27_v44, 7  ;;  %vm329_vm8 = vcmp.eq.s32.totalorder %v509_v47, 0  ;;  %vm352_vm9 = vcmp.eq.s32.totalorder %v509_v47, 1  ;;  %vm375_vm10 = vcmp.eq.s32.totalorder %v509_v47, 2 }
  0x87   :  { %v76_v6 = vadd.f32 %v416_v4, %v60_v1  ;;  %v77_v7 = vadd.f32 %v417_v5, %v61_v2  ;;  %v78_v8 = vadd.f32 %v418_v3, %v62_v0  ;;  %v428_v19 = vsel %vm329_vm8, 1.0, %v476_v55 }
  0x88   :  { %vm282_vm3 = vcmp.eq.s32.totalorder %v281_v62, %v509_v47  ;;  %v334_v4 = vadd.s32 1, %v281_v62  ;;  %v357_v5 = vadd.s32 2, %v281_v62  ;;  %v429_v20 = vsel %vm352_vm9, 1.0, %v476_v55 }
  0x89   :  { %v92_v12 = vadd.f32 %v419_v10, %v76_v6  ;;  %v93_v13 = vadd.f32 %v420_v11, %v77_v7  ;;  %v94_v14 = vadd.f32 %v421_v9, %v78_v8  ;;  %v425_v3 = vsel %vm282_vm3, 1.0, %v476_v55 }
  0x8a   :  { %v316_v6 = vand.u32 7, %v281_v62  ;;  %v339_v7 = vand.u32 7, %v334_v4  ;;  %v362_v8 = vand.u32 7, %v357_v5  ;;  %v380_v9 = vadd.s32 3, %v281_v62 }
  0x8b   :  { %151 = vmatmul.f32.vlgmr.msra.gmra.mxu0 %v92_v12  ;;  %171 = vmatmul.f32.vlgmr.msra.gmra.mxu1 %v93_v13  ;;  %vm398_vm11 = vcmp.eq.s32.totalorder %v509_v47, 3 }
  0x8c   :  { %422 = vmatmul.msk.f32.vlgmr.msra.gmra.mxu2 %vm131_vm12, %v94_v14  ;;  %vm324_vm4 = vcmp.eq.s32.totalorder %v509_v47, %v316_v6  ;;  %vm347_vm5 = vcmp.eq.s32.totalorder %v509_v47, %v339_v7  ;;  %vm370_vm6 = vcmp.eq.s32.totalorder %v509_v47, %v362_v8  ;;  %v385_v10 = vand.u32 7, %v380_v9 }
  0x8d   :  { %vm403_vm12 = vcmask 31744  }
  0x8e   :  { %vm393_vm7 = vcmp.eq.s32.totalorder %v509_v47, %v385_v10 }
 0x108   :  { %v152_v22 = vpop.f32.mrf.mxu0  ;;  %v172_v24 = vpop.f32.mrf.mxu1 }
 0x109   :  { %v153_v23 = vadd.f32 %v441_v21, %v152_v22 }
 0x10b   :  { %v173_v25 = vadd.f32 %v172_v24, %v153_v23 }
 0x10f   :  { %v192_v26 = vpop.f32.mrf.mxu2 }
 0x110   :  { %v193_v27 = vadd.f32 %v192_v26, %v173_v25  ;;  %v430_v25 = vsel %vm375_vm10, 1.0, %v476_v55 }
 0x112   :  { %v195_v28 = vmax.f32 %v193_v27, 0.0 }
 0x114   :  { %230 = vmatmul.f32.vlgmr.msra.gmra.mxu3 %v195_v28  ;;  %v431_v28 = vsel %vm398_vm11, 1.0, %v476_v55 }
 0x197   :  { %v231_v30 = vpop.f32.mrf.mxu3 }
 0x198   :  { %v232_v32 = vadd.f32 %v442_v29, %v231_v30 }
 0x19a   :  { %v234_v33 = vmax.f32 %v232_v32, 0.0 }
 0x19c   :  { %246 = vrot.lane.b32.xlu2 %v234_v33, %s477_s23  ;;  %v238_v35 = vmul.f32 %v234_v33, %v234_v33 }
 0x19e   :  { %v243_v36 = vmul.f32 %v242_v34, %v238_v35  ;;  %v239_v37 = vmul.f32 %v423_v31, %v238_v35 }
 0x1a0   :  { %244 = vadd.xlane.f32.xlu1 %v243_v36  ;;  %240 = vadd.xlane.f32.xlu0 %v239_v37 }
 0x1a4   :  { %268 = vperm.xlu2 %440, %v266_v38  }
 0x1f6   :  { %v247_v39 = vpop.permute.xlu2 %246 }
 0x1f7   :  { %v248_v40 = vmul.f32 %v247_v39, %v234_v33 }
 0x1f9   :  { %v249_v41 = vmul.f32 %v423_v31, %v248_v40 }
 0x1fb   :  { %250 = vadd.xlane.f32.xlu2 %v249_v41 }
 0x1fe   :  { %v269_v43 = vpop.permute.xlu2 %268 }
 0x1ff   :  { %vm270_vm14 = vcmp.eq.s32.totalorder %v509_v47, %v269_v43 }
 0x200   :  { %v424_v45 = vsel %vm270_vm14, 1.0, %v476_v55 }
 0x201   :  { %v275_v46 = vmul.f32 %v443_v42, %v424_v45 }
 0x203   :  { %276 = vadd.xlane.f32.xlu2 %v275_v46 }
 0x213   :  { %v245_v48 = vpop.xlane.xlu1 %244  ;;  %v241_v49 = vpop.xlane.xlu0 %240 }
 0x214   :  { %v253_v50 = vmax.f32 %v245_v48, 1e-16  ;;  %v252_v51 = vmax.f32 %v241_v49, 1e-16 }
 0x216   :  { %v254_v52 = vmul.f32 %v253_v50, %v252_v51 }
 0x218   :  { %444 = vrsqrt.f32 %v254_v52  ;;  %vm261_vm0 = vweird.f32 %v254_v52 }
 0x21e   :  { %v445_v53 = vpop.eup %444 }
 0x21f   :  { %v256_v54 = vmul.f32 %v445_v53, %v254_v52  ;;  %vm262_vm15 = vweird.f32 %v445_v53 }
 0x220   :  { %vm263_vm1 = vmor %vm261_vm0, %vm262_vm15 }
 0x221   :  { %v257_v56 = vmul.f32 %v445_v53, %v256_v54 }
 0x223   :  { %v258_v57 = vmul.f32 0.5, %v257_v56 }
 0x225   :  { %v259_v58 = vsub.f32 1.5, %v258_v57 }
 0x227   :  { %v260_v60 = vmul.f32 %v445_v53, %v259_v58 }
 0x229   :  { %v264_v61 = vsel %vm263_vm1, %v445_v53, %v260_v60 }
 0x26e   :  { %v251_v59 = vpop.xlane.xlu2 %250 }
 0x26f   :  { %v265_v63 = vmul.f32 %v264_v61, %v251_v59 }
 0x276   :  { %v277_v0 = vpop.xlane.xlu2 %276 }
 0x277   :  { %v278_v1 = vsub.f32 %v265_v63, %v277_v0 }
 0x279   :  { %v279_v2 = vmul.f32 2.0, %v278_v1 }
 0x27b   :  { %426 = vmatpush.xpose.msk.msrb.mxu2 %vm285_vm2, %v279_v2 }
 0x27e   :  { %427 = vmatmul.msk.f32.vlgmr.msrb.gmra.mxu2 %vm285_vm2, %v425_v3 }
 0x301   :  { %v309_v44 = vpop.f32.mrf.mxu2 }
 0x302   :  { %v325_v11 = vsel %vm324_vm4, %v309_v44, 0.0  ;;  %v348_v12 = vsel %vm347_vm5, %v309_v44, 0.0  ;;  %v371_v13 = vsel %vm370_vm6, %v309_v44, 0.0  ;;  %v394_v17 = vsel %vm393_vm7, %v309_v44, 0.0 }
 0x303   :  { %v326_v14 = vsel %vm285_vm2, %v325_v11, 0.0  ;;  %v349_v15 = vsel %vm285_vm2, %v348_v12, 0.0  ;;  %v372_v16 = vsel %vm285_vm2, %v371_v13, 0.0  ;;  %v395_v18 = vsel %vm285_vm2, %v394_v17, 0.0 }
 0x304   :  { %327 = vadd.xlane.f32.xlu0 %v326_v14  ;;  %350 = vadd.xlane.f32.xlu1 %v349_v15 }
 0x305   :  { %373 = vadd.xlane.f32.xlu2 %v372_v16 }
 0x30c   :  { %396 = vadd.xlane.f32.xlu0 %v395_v18 }
 0x377   :  { %v328_v21 = vpop.xlane.xlu0 %327  ;;  %v351_v22 = vpop.xlane.xlu1 %350 }
 0x378   :  { %v332_v23 = vmul.f32 %v428_v19, %v328_v21  ;;  %v355_v24 = vmul.f32 %v429_v20, %v351_v22  ;;  %v374_v26 = vpop.xlane.xlu2 %373 }
 0x379   :  { %v378_v29 = vmul.f32 %v430_v25, %v374_v26 }
 0x37a   :  { %v356_v27 = vadd.f32 %v355_v24, %v332_v23 }
 0x37c   :  { %v379_v31 = vadd.f32 %v378_v29, %v356_v27 }
 0x37f   :  { %v397_v30 = vpop.xlane.xlu0 %396 }
 0x380   :  { %v401_v32 = vmul.f32 %v431_v28, %v397_v30 }
 0x382   :  { %v402_v33 = vadd.f32 %v401_v32, %v379_v31 }
 0x384   :  { %404 = vst.msk [vmem:[%s566_s2] sm:$0xff] %vm403_vm12, %v402_v33 }
 0x385   :  { %409 = vsyncpa [#allocation3], 1 }

</bundles_post_ra>
